<compile_context>
chip_gen: v7x
topology: tpu7x:2x2x1
jax: 0.10.0
libtpu: 0.0.40
codegen_flags: <defaults>
</compile_context>

<pallas_src>
import jax
import jax.numpy as jnp
from jax import lax
from jax.experimental import pallas as pl
from jax.experimental.pallas import tpu as pltpu

F32 = jnp.float32
BF16 = jnp.bfloat16

# contract the last dims of both operands: (O, D) x (N, D) -> (O, N)
_NT = (((1,), (1,)), ((), ()))


# --------------------------------------------------------------------------
# shared in-kernel helpers (RoPE + rank combine)
# --------------------------------------------------------------------------
def _shift_up(t):            # out[k] = t[k+1]   (wrap junk only at odd last pos)
    n = t.shape[-1]
    if n % 128 == 0:
        return pltpu.roll(t, n - 1, axis=t.ndim - 1)
    return jnp.concatenate([t[:, 1:], t[:, :1]], axis=1)


def _shift_down(t):          # out[k] = t[k-1]   (wrap junk only at even pos 0)
    n = t.shape[-1]
    if n % 128 == 0:
        return pltpu.roll(t, 1, axis=t.ndim - 1)
    return jnp.concatenate([t[:, -1:], t[:, :-1]], axis=1)


def _rope(t, cos_i, sin_e, sin_o):
    # interleaved complex multiply:
    #   out[2m]   = t[2m]*cos[m]   - t[2m+1]*sin[m]
    #   out[2m+1] = t[2m+1]*cos[m] + t[2m]*sin[m]
    # sin_e is zero at odd positions, sin_o zero at even positions, so the
    # wrap-around junk of the shifts is always multiplied by zero.
    return t * cos_i + _shift_up(t) * sin_e + _shift_down(t) * sin_o


def _rank_combine(a_t, b, rank, H, HD):
    # a_t: (rank*H, N) f32, b: (N, rank*HD) f32 -> (H, N, HD) f32
    # One broadcast per rank.  This relayout-heavy step now runs only in the
    # prologue (once per seq block), not in the per-kv-step hot path.
    out = a_t[0:H, :, None] * b[None, :, 0:HD]
    for r in range(1, rank):
        out = out + a_t[r * H:(r + 1) * H, :, None] * b[None, :, r * HD:(r + 1) * HD]
    return out


# --------------------------------------------------------------------------
# Prologue kernel: x -> Q / K / V factors (projection + RoPE + rank-combine)
# --------------------------------------------------------------------------
def _make_proj_kernel(H, HD, RQ, RK, RV):
    def kernel(x_ref, waq_ref, wbq_ref, wak_ref, wbk_ref, wav_ref, wbv_ref,
               ropeq_ref, ropek_ref, q_out, k_out, v_out):
        x = x_ref[0]                                                   # (TP, D) bf16
        aqT = lax.dot_general(waq_ref[...], x, _NT, preferred_element_type=F32)
        akT = lax.dot_general(wak_ref[...], x, _NT, preferred_element_type=F32)
        avT = lax.dot_general(wav_ref[...], x, _NT, preferred_element_type=F32)
        bq = jnp.dot(x, wbq_ref[...], preferred_element_type=F32)     # (TP, RQ*HD)
        bk = jnp.dot(x, wbk_ref[...], preferred_element_type=F32)
        bv = jnp.dot(x, wbv_ref[...], preferred_element_type=F32)
        bq = _rope(bq, ropeq_ref[0], ropeq_ref[1], ropeq_ref[2])
        bk = _rope(bk, ropek_ref[0], ropek_ref[1], ropek_ref[2])
        q_out[0] = _rank_combine(aqT, bq, RQ, H, HD).astype(q_out.dtype)  # (H, TP, HD)
        k_out[0] = _rank_combine(akT, bk, RK, H, HD).astype(k_out.dtype)
        v_out[0] = _rank_combine(avT, bv, RV, H, HD).astype(v_out.dtype)
    return kernel


# --------------------------------------------------------------------------
# Main kernel: flash attention over the precomputed factors + output proj
# --------------------------------------------------------------------------
def _make_attn_kernel(H, TQ, HD):
    def kernel(q_ref, k_ref, v_ref, wo_ref, o_ref, m_scr, l_scr, acc_scr):
        j = pl.program_id(2)

        @pl.when(j == 0)
        def _():
            m_scr[...] = jnp.full((H, TQ, 1), -jnp.inf, F32)
            l_scr[...] = jnp.zeros((H, TQ, 1), F32)
            acc_scr[...] = jnp.zeros((H, TQ, HD), F32)

        q3 = q_ref[0]                                                  # (H, TQ, HD) bf16
        k3 = k_ref[0]                                                  # (H, TK, HD) bf16
        v3 = v_ref[0]                                                  # (H, TK, HD) bf16

        # online-softmax update, all heads batched (scale folded into Q factors)
        s = jnp.einsum('hqd,hkd->hqk', q3, k3,
                       preferred_element_type=F32)                     # (H, TQ, TK)
        m_prev = m_scr[...]
        m_new = jnp.maximum(m_prev, jnp.max(s, axis=-1, keepdims=True))
        alpha = jnp.exp(m_prev - m_new)
        # NOTE: exp kept in f32 for identical behavior on v5e (no bf16 EUP);
        # the bf16-exp micro-opt for v6e/v7x is deliberately left out.
        p = jnp.exp(s - m_new)
        l_scr[...] = alpha * l_scr[...] + jnp.sum(p, axis=-1, keepdims=True)
        acc_scr[...] = alpha * acc_scr[...] + jnp.einsum(
            'hqk,hkd->hqd', p.astype(BF16), v3, preferred_element_type=F32)
        m_scr[...] = m_new

        # finalize: normalize + fused output projection (no per-head concat)
        @pl.when(j == pl.num_programs(2) - 1)
        def _():
            o3 = (acc_scr[...] * pl.reciprocal(l_scr[...], approx=False)).astype(BF16)
            # batched MXU matmul over heads, then a cheap major-axis reduce
            yh = jnp.einsum('hqd,hdD->hqD', o3, wo_ref[...],
                            preferred_element_type=F32)                # (H, TQ, D)
            o_ref[0] = jnp.sum(yh, axis=0).astype(o_ref.dtype)         # (TQ, D)

        # TODO(synk): the PyTorch `if mask:` branch (masked_fill) is not
        # implemented — only the mask=None path is supported.

    return kernel


# --------------------------------------------------------------------------
# small wrapper utilities
# --------------------------------------------------------------------------
def _pick_tile(s, target):
    """Largest divisor of s that is <= target, preferring multiples of 8."""
    best = None
    for t in range(min(s, target), 0, -1):
        if s % t == 0:
            if best is None:
                best = t
            if t % 8 == 0 or t == s:
                return t
    return best if best is not None else s


def _tpu_vmem_bytes():
    try:
        return int(pltpu.get_tpu_info().vmem_capacity_bytes)
    except Exception:
        return 64 * 1024 * 1024      # v7x-safe fallback


def _nbytes(a):
    return int(a.size) * int(a.dtype.itemsize)


# --------------------------------------------------------------------------
# Wrapper: parameter plumbing + the two pallas_calls
# --------------------------------------------------------------------------
def tpa_forward(x, complex_freq, params, *, heads, head_dim,
                rank_q, rank_k, rank_v, block_q=None, block_k=None):
    B, S, D = x.shape
    H, HD = heads, head_dim
    RQ, RK, RV = rank_q, rank_k, rank_v

    phys_vmem = _tpu_vmem_bytes()
    # generation-aware tiling: raise the q tile only on 128 MiB parts (v5e/v6e);
    # keep 256 on 64 MiB parts (v7x).
    if block_q is None:
        block_q = 512 if phys_vmem >= (96 << 20) else 256
    if block_k is None:
        block_k = 256

    TQ = _pick_tile(S, block_q)
    TK = _pick_tile(S, block_k)
    TP = _pick_tile(S, 256)
    NQ, NK, NP = S // TQ, S // TK, S // TP

    def vmem_limit(need):
        lim = int(need) * 2 + (8 << 20)
        lim = max(lim, 32 << 20)
        return min(lim, int(phys_vmem * 0.9))

    # RoPE constants. Faithful to the PyTorch code: complex_freq indexed at
    # position s == sequence length, broadcast to every token / rank.
    freq_s = complex_freq[0, S, 0, :]                                  # (HD//2,) complex
    cos = jnp.real(freq_s).astype(F32)
    sin = jnp.imag(freq_s).astype(F32)
    zeros = jnp.zeros_like(sin)
    cos_i = jnp.repeat(cos, 2)                                         # [c0,c0,c1,c1,...]
    sin_e = jnp.stack([-sin, zeros], axis=-1).reshape(-1)              # [-s0,0,-s1,0,...]
    sin_o = jnp.stack([zeros, sin], axis=-1).reshape(-1)               # [0,s0,0,s1,...]

    def rope_const(rank):
        return jnp.stack([jnp.tile(cos_i, rank),
                          jnp.tile(sin_e, rank),
                          jnp.tile(sin_o, rank)], axis=0)[:, None, :]  # (3,1,rank*HD)

    rope_q = rope_const(RQ)
    rope_k = rope_const(RK)

    # Fold the attention scale and the 1/rank scales into the A-projection
    # weights (pure rescaling; removes per-head score/value VPU multiplies).
    attn_scale = float(HD) ** -0.5
    waq = (params["W_Aq"] * (attn_scale / RQ)).astype(BF16)            # (RQ*H, D)
    wak = (params["W_Ak"] * (1.0 / RK)).astype(BF16)                   # (RK*H, D)
    wav = (params["W_Av"] * (1.0 / RV)).astype(BF16)                   # (RV*H, D)
    wbq = params["W_Bq"].T.astype(BF16)                                # (D, RQ*HD)
    wbk = params["W_Bk"].T.astype(BF16)                                # (D, RK*HD)
    wbv = params["W_Bv"].T.astype(BF16)                                # (D, RV*HD)
    wo3 = params["Wo"].T.reshape(H, HD, D).astype(BF16)                # (H, HD, D)
    x_bf = x.astype(BF16)

    # --------------------------- prologue: build Q/K/V factors ------------
    def const_spec2(shape):
        zero = (0,) * len(shape)
        return pl.BlockSpec(shape, lambda b, i: zero)

    proj_kernel = _make_proj_kernel(H, HD, RQ, RK, RV)
    proj_grid = pltpu.PrefetchScalarGridSpec(
        num_scalar_prefetch=0,
        grid=(B, NP),
        in_specs=[
            pl.BlockSpec((1, TP, D), lambda b, i: (b, i, 0)),          # x block
            const_spec2(waq.shape), const_spec2(wbq.shape),
            const_spec2(wak.shape), const_spec2(wbk.shape),
            const_spec2(wav.shape), const_spec2(wbv.shape),
            const_spec2(rope_q.shape), const_spec2(rope_k.shape),
        ],
        out_specs=[
            pl.BlockSpec((1, H, TP, HD), lambda b, i: (b, 0, i, 0)),
            pl.BlockSpec((1, H, TP, HD), lambda b, i: (b, 0, i, 0)),
            pl.BlockSpec((1, H, TP, HD), lambda b, i: (b, 0, i, 0)),
        ],
    )

    proj_need = (2 * TP * D * 2
                 + 2 * sum(_nbytes(w) for w in
                           (waq, wbq, wak, wbk, wav, wbv, rope_q, rope_k))
                 + 2 * 3 * H * TP * HD * 2
                 + 8 * TP * (RQ + RK + RV) * (H + HD) * 4)
    proj_cost = pl.CostEstimate(
        flops=2 * B * S * D * (RQ + RK + RV) * (H + HD),
        transcendentals=0,
        bytes_accessed=(_nbytes(x_bf)
                        + sum(_nbytes(w) for w in (waq, wbq, wak, wbk, wav, wbv))
                        + 3 * B * H * S * HD * 2))

    q3, k3, v3 = pl.pallas_call(
        proj_kernel,
        out_shape=[jax.ShapeDtypeStruct((B, H, S, HD), BF16)] * 3,
        grid_spec=proj_grid,
        compiler_params=pltpu.CompilerParams(
            dimension_semantics=("parallel", "parallel"),
            vmem_limit_bytes=vmem_limit(proj_need)),
        cost_estimate=proj_cost,
    )(x_bf, waq, wbq, wak, wbk, wav, wbv, rope_q, rope_k)

    # --------------------------- main: flash attention + Wo ---------------
    def const_spec3(shape):
        zero = (0,) * len(shape)
        return pl.BlockSpec(shape, lambda b, i, j: zero)

    attn_kernel = _make_attn_kernel(H, TQ, HD)
    attn_grid = pltpu.PrefetchScalarGridSpec(
        num_scalar_prefetch=0,
        grid=(B, NQ, NK),
        in_specs=[
            pl.BlockSpec((1, H, TQ, HD), lambda b, i, j: (b, 0, i, 0)),  # Q factors
            pl.BlockSpec((1, H, TK, HD), lambda b, i, j: (b, 0, j, 0)),  # K factors
            pl.BlockSpec((1, H, TK, HD), lambda b, i, j: (b, 0, j, 0)),  # V factors
            const_spec3(wo3.shape),                                       # Wo (H,HD,D)
        ],
        out_specs=pl.BlockSpec((1, TQ, D), lambda b, i, j: (b, i, 0)),
        scratch_shapes=[
            pltpu.VMEM((H, TQ, 1), F32),     # running max
            pltpu.VMEM((H, TQ, 1), F32),     # running sum
            pltpu.VMEM((H, TQ, HD), F32),    # output accumulator
        ],
    )

    attn_need = (2 * H * TQ * HD * 2                   # Q block (double-buffered)
                 + 2 * 2 * H * TK * HD * 2             # K + V blocks
                 + 2 * _nbytes(wo3)
                 + 2 * TQ * D * x.dtype.itemsize       # output block
                 + 2 * H * TQ * 4 + H * TQ * HD * 4    # scratch m/l/acc
                 + 2 * H * TQ * TK * 4                 # s, p temporaries
                 + H * TQ * D * 4)                     # finalize yh temporary
    attn_cost = pl.CostEstimate(
        flops=4 * B * H * S * S * HD + 2 * B * S * H * HD * D,
        transcendentals=B * H * S * S,
        bytes_accessed=(B * H * S * HD * 2             # Q factors read once
                        + 2 * NQ * B * H * S * HD * 2  # K/V factors read NQ times
                        + _nbytes(wo3)
                        + B * S * D * x.dtype.itemsize))

    # NOTE(v7x): 2 TensorCores shard the "parallel" prefix; B*NQ >= 2 here.
    return pl.pallas_call(
        attn_kernel,
        out_shape=jax.ShapeDtypeStruct((B, S, D), x.dtype),
        grid_spec=attn_grid,
        compiler_params=pltpu.CompilerParams(
            dimension_semantics=("parallel", "parallel", "arbitrary"),
            vmem_limit_bytes=vmem_limit(attn_need)),
        cost_estimate=attn_cost,
    )(q3, k3, v3, wo3)


# --------------------------------------------------------------------------
# Pure-JAX reference (faithful port of the PyTorch forward, mask=None path)
# --------------------------------------------------------------------------
def tpa_reference(x, complex_freq, params, *, heads, head_dim, rank_q, rank_k, rank_v):
    b, s, d = x.shape
    hp = jax.lax.Precision.HIGHEST

    Aq = jnp.einsum("bsd,od->bso", x, params["W_Aq"], precision=hp)
    Ak = jnp.einsum("bsd,od->bso", x, params["W_Ak"], precision=hp)
    Av = jnp.einsum("bsd,od->bso", x, params["W_Av"], precision=hp)
    Bq = jnp.einsum("bsd,od->bso", x, params["W_Bq"], precision=hp)
    Bk = jnp.einsum("bsd,od->bso", x, params["W_Bk"], precision=hp)
    Bv = jnp.einsum("bsd,od->bso", x, params["W_Bv"], precision=hp)

    Aq = Aq.reshape(b, s, rank_q, heads)
    Ak = Ak.reshape(b, s, rank_k, heads)
    Av = Av.reshape(b, s, rank_v, heads)
    Bq = Bq.reshape(b, s, rank_q, head_dim)
    Bk = Bk.reshape(b, s, rank_k, head_dim)
    Bv = Bv.reshape(b, s, rank_v, head_dim)

    def rope(t):
        bb, ss, hh, dd = t.shape
        tc = t.reshape(bb, ss, hh, dd // 2, 2)
        tc = lax.complex(tc[..., 0], tc[..., 1])
        tc = tc * complex_freq[:, ss, :, :]
        return jnp.stack([jnp.real(tc), jnp.imag(tc)], axis=-1).reshape(bb, ss, hh, dd)

    Bq, Bk = rope(Bq), rope(Bk)

    Q = jnp.einsum("bsrh,bsre->bhse", Aq, Bq, precision=hp) / rank_q
    K = jnp.einsum("bsrh,bsre->bhse", Ak, Bk, precision=hp) / rank_k
    V = jnp.einsum("bsrh,bsre->bhse", Av, Bv, precision=hp) / rank_v

    scores = jnp.einsum("bhse,bhte->bhst", Q, K, precision=hp) * (head_dim ** -0.5)
    w = jax.nn.softmax(scores, axis=-1)
    out = jnp.einsum("bhst,bhte->bhse", w, V, precision=hp)
    out = out.transpose(0, 2, 1, 3).reshape(b, s, d)
    return jnp.einsum("bsd,od->bso", out, params["Wo"], precision=hp)


# --------------------------------------------------------------------------
# Deterministic parameter / input construction + run
# --------------------------------------------------------------------------
if __name__ == "__main__":
    B, S = 2, 8
    HEADS, HEAD_DIM = 4, 8
    HIDDEN = HEADS * HEAD_DIM            # 32 (required for the final .view)
    RQ, RK, RV = 2, 2, 2
    S_MAX = 2 * S                        # complex_freq is indexed at position S

    key = jax.random.PRNGKey(0)
    keys = jax.random.split(key, 8)

    def linear_w(k, out_f, in_f):        # nn.Linear default init (uniform +-1/sqrt(in))
        bound = 1.0 / (in_f ** 0.5)
        return jax.random.uniform(k, (out_f, in_f), jnp.float32, -bound, bound)

    params = {
        "W_Aq": linear_w(keys[0], RQ * HEADS, HIDDEN),
        "W_Ak": linear_w(keys[1], RK * HEADS, HIDDEN),
        "W_Av": linear_w(keys[2], RV * HEADS, HIDDEN),
        "W_Bq": linear_w(keys[3], RQ * HEAD_DIM, HIDDEN),
        "W_Bk": linear_w(keys[4], RK * HEAD_DIM, HIDDEN),
        "W_Bv": linear_w(keys[5], RV * HEAD_DIM, HIDDEN),
        "Wo":   linear_w(keys[6], HIDDEN, HIDDEN),
    }

    x = jax.random.normal(keys[7], (B, S, HIDDEN), jnp.float32)

    # standard RoPE frequency table, shape (1, S_MAX, 1, HEAD_DIM//2), complex64
    inv_freq = 1.0 / (10000.0 ** (jnp.arange(HEAD_DIM // 2, dtype=jnp.float32) * 2.0 / HEAD_DIM))
    angles = jnp.arange(S_MAX, dtype=jnp.float32)[:, None] * inv_freq[None, :]
    complex_freq = jnp.exp(1j * angles.astype(jnp.complex64))[None, :, None, :]

    out = tpa_forward(x, complex_freq, params,
                      heads=HEADS, head_dim=HEAD_DIM,
                      rank_q=RQ, rank_k=RK, rank_v=RV)
    out = jax.block_until_ready(out)

    ref = tpa_reference(x, complex_freq, params,
                        heads=HEADS, head_dim=HEAD_DIM,
                        rank_q=RQ, rank_k=RK, rank_v=RV)
    ref = jax.block_until_ready(ref)

    max_err = float(jnp.max(jnp.abs(out - ref)))
    assert out.shape == (B, S, HIDDEN)
    # bf16 MXU operands (f32 accumulation) vs. an all-f32 HIGHEST-precision
    # reference -> tolerance loosened accordingly.
    assert jnp.allclose(out, ref, atol=2e-2, rtol=2e-2), f"max abs err = {max_err}"

    print("KERNEL_OK")
</pallas_src>

<mosaic_0001>
module attributes {stable_mosaic.version = 11 : i64} {
  func.func @kernel(%arg0: i32, %arg1: i32, %arg2: memref<1x8x32xbf16, #tpu.memory_space<vmem>>, %arg3: memref<8x32xbf16, #tpu.memory_space<vmem>>, %arg4: memref<32x16xbf16, #tpu.memory_space<vmem>>, %arg5: memref<8x32xbf16, #tpu.memory_space<vmem>>, %arg6: memref<32x16xbf16, #tpu.memory_space<vmem>>, %arg7: memref<8x32xbf16, #tpu.memory_space<vmem>>, %arg8: memref<32x16xbf16, #tpu.memory_space<vmem>>, %arg9: memref<3x1x16xf32, #tpu.memory_space<vmem>>, %arg10: memref<3x1x16xf32, #tpu.memory_space<vmem>>, %arg11: memref<1x4x8x8xbf16, #tpu.memory_space<vmem>>, %arg12: memref<1x4x8x8xbf16, #tpu.memory_space<vmem>>, %arg13: memref<1x4x8x8xbf16, #tpu.memory_space<vmem>>) attributes {dimension_semantics = [#tpu.dimension_semantics<parallel>, #tpu.dimension_semantics<parallel>], iteration_bounds = array<i64: 2, 1>, scalar_prefetch = 0 : i64, scratch_operands = 0 : i64, tpu.core_type = #tpu.core_type<tc>, window_params = [{transform_indices = @transform_0, window_bounds = array<i64: 1, 8, 32>}, {pipeline_mode = #tpu.pipeline_mode<synchronous>, transform_indices = @transform_1, window_bounds = array<i64: 8, 32>}, {pipeline_mode = #tpu.pipeline_mode<synchronous>, transform_indices = @transform_2, window_bounds = array<i64: 32, 16>}, {pipeline_mode = #tpu.pipeline_mode<synchronous>, transform_indices = @transform_3, window_bounds = array<i64: 8, 32>}, {pipeline_mode = #tpu.pipeline_mode<synchronous>, transform_indices = @transform_4, window_bounds = array<i64: 32, 16>}, {pipeline_mode = #tpu.pipeline_mode<synchronous>, transform_indices = @transform_5, window_bounds = array<i64: 8, 32>}, {pipeline_mode = #tpu.pipeline_mode<synchronous>, transform_indices = @transform_6, window_bounds = array<i64: 32, 16>}, {pipeline_mode = #tpu.pipeline_mode<synchronous>, transform_indices = @transform_7, window_bounds = array<i64: 3, 1, 16>}, {pipeline_mode = #tpu.pipeline_mode<synchronous>, transform_indices = @transform_8, window_bounds = array<i64: 3, 1, 16>}, {transform_indices = @transform_9, window_bounds = array<i64: 1, 4, 8, 8>}, {transform_indices = @transform_10, window_bounds = array<i64: 1, 4, 8, 8>}, {transform_indices = @transform_11, window_bounds = array<i64: 1, 4, 8, 8>}]} {
    %c0 = arith.constant 0 : index
    %c0_0 = arith.constant 0 : index
    %c0_1 = arith.constant 0 : index
    %0 = vector.load %arg2[%c0, %c0_0, %c0_1] : memref<1x8x32xbf16, #tpu.memory_space<vmem>>, vector<1x8x32xbf16>
    %1 = vector.shape_cast %0 : vector<1x8x32xbf16> to vector<8x32xbf16>
    %c0_2 = arith.constant 0 : index
    %c0_3 = arith.constant 0 : index
    %2 = vector.load %arg3[%c0_2, %c0_3] : memref<8x32xbf16, #tpu.memory_space<vmem>>, vector<8x32xbf16>
    %cst = arith.constant dense<0.000000e+00> : vector<8x8xf32>
    %3 = tpu.matmul %2, %1, %cst {dimension_numbers = #tpu.dot_dimension_numbers<[1], [1], [0], [0], [0, 0, 1, 0], [], []>} : vector<8x32xbf16>, vector<8x32xbf16>, vector<8x8xf32> -> vector<8x8xf32>
    %c0_4 = arith.constant 0 : index
    %c0_5 = arith.constant 0 : index
    %4 = vector.load %arg5[%c0_4, %c0_5] : memref<8x32xbf16, #tpu.memory_space<vmem>>, vector<8x32xbf16>
    %cst_6 = arith.constant dense<0.000000e+00> : vector<8x8xf32>
    %5 = tpu.matmul %4, %1, %cst_6 {dimension_numbers = #tpu.dot_dimension_numbers<[1], [1], [0], [0], [0, 0, 1, 0], [], []>} : vector<8x32xbf16>, vector<8x32xbf16>, vector<8x8xf32> -> vector<8x8xf32>
    %c0_7 = arith.constant 0 : index
    %c0_8 = arith.constant 0 : index
    %6 = vector.load %arg7[%c0_7, %c0_8] : memref<8x32xbf16, #tpu.memory_space<vmem>>, vector<8x32xbf16>
    %cst_9 = arith.constant dense<0.000000e+00> : vector<8x8xf32>
    %7 = tpu.matmul %6, %1, %cst_9 {dimension_numbers = #tpu.dot_dimension_numbers<[1], [1], [0], [0], [0, 0, 1, 0], [], []>} : vector<8x32xbf16>, vector<8x32xbf16>, vector<8x8xf32> -> vector<8x8xf32>
    %c0_10 = arith.constant 0 : index
    %c0_11 = arith.constant 0 : index
    %8 = vector.load %arg4[%c0_10, %c0_11] : memref<32x16xbf16, #tpu.memory_space<vmem>>, vector<32x16xbf16>
    %cst_12 = arith.constant dense<0.000000e+00> : vector<8x16xf32>
    %9 = tpu.matmul %1, %8, %cst_12 {dimension_numbers = #tpu.dot_dimension_numbers<[1], [0], [0], [1], [0, 0, 1, 1], [], []>} : vector<8x32xbf16>, vector<32x16xbf16>, vector<8x16xf32> -> vector<8x16xf32>
    %c0_13 = arith.constant 0 : index
    %c0_14 = arith.constant 0 : index
    %10 = vector.load %arg6[%c0_13, %c0_14] : memref<32x16xbf16, #tpu.memory_space<vmem>>, vector<32x16xbf16>
    %cst_15 = arith.constant dense<0.000000e+00> : vector<8x16xf32>
    %11 = tpu.matmul %1, %10, %cst_15 {dimension_numbers = #tpu.dot_dimension_numbers<[1], [0], [0], [1], [0, 0, 1, 1], [], []>} : vector<8x32xbf16>, vector<32x16xbf16>, vector<8x16xf32> -> vector<8x16xf32>
    %c0_16 = arith.constant 0 : index
    %c0_17 = arith.constant 0 : index
    %12 = vector.load %arg8[%c0_16, %c0_17] : memref<32x16xbf16, #tpu.memory_space<vmem>>, vector<32x16xbf16>
    %cst_18 = arith.constant dense<0.000000e+00> : vector<8x16xf32>
    %13 = tpu.matmul %1, %12, %cst_18 {dimension_numbers = #tpu.dot_dimension_numbers<[1], [0], [0], [1], [0, 0, 1, 1], [], []>} : vector<8x32xbf16>, vector<32x16xbf16>, vector<8x16xf32> -> vector<8x16xf32>
    %c0_19 = arith.constant 0 : index
    %c0_20 = arith.constant 0 : index
    %c0_21 = arith.constant 0 : index
    %14 = vector.load %arg9[%c0_19, %c0_20, %c0_21] : memref<3x1x16xf32, #tpu.memory_space<vmem>>, vector<1x1x16xf32>
    %15 = vector.shape_cast %14 : vector<1x1x16xf32> to vector<1x16xf32>
    %c1 = arith.constant 1 : index
    %c0_22 = arith.constant 0 : index
    %c0_23 = arith.constant 0 : index
    %16 = vector.load %arg9[%c1, %c0_22, %c0_23] : memref<3x1x16xf32, #tpu.memory_space<vmem>>, vector<1x1x16xf32>
    %17 = vector.shape_cast %16 : vector<1x1x16xf32> to vector<1x16xf32>
    %c2 = arith.constant 2 : index
    %c0_24 = arith.constant 0 : index
    %c0_25 = arith.constant 0 : index
    %18 = vector.load %arg9[%c2, %c0_24, %c0_25] : memref<3x1x16xf32, #tpu.memory_space<vmem>>, vector<1x1x16xf32>
    %19 = vector.shape_cast %18 : vector<1x1x16xf32> to vector<1x16xf32>
    %20 = vector.broadcast %15 : vector<1x16xf32> to vector<8x16xf32>
    %21 = arith.mulf %9, %20 : vector<8x16xf32>
    %22 = vector.extract_strided_slice %9 {offsets = [0, 1], sizes = [8, 15], strides = [1, 1]} : vector<8x16xf32> to vector<8x15xf32>
    %23 = vector.extract_strided_slice %9 {offsets = [0, 0], sizes = [8, 1], strides = [1, 1]} : vector<8x16xf32> to vector<8x1xf32>
    %24 = tpu.concatenate %22, %23 in 1 : vector<8x15xf32>, vector<8x1xf32> -> vector<8x16xf32>
    %25 = vector.broadcast %17 : vector<1x16xf32> to vector<8x16xf32>
    %26 = arith.mulf %24, %25 : vector<8x16xf32>
    %27 = arith.addf %21, %26 : vector<8x16xf32>
    %28 = vector.extract_strided_slice %9 {offsets = [0, 15], sizes = [8, 1], strides = [1, 1]} : vector<8x16xf32> to vector<8x1xf32>
    %29 = vector.extract_strided_slice %9 {offsets = [0, 0], sizes = [8, 15], strides = [1, 1]} : vector<8x16xf32> to vector<8x15xf32>
    %30 = tpu.concatenate %28, %29 in 1 : vector<8x1xf32>, vector<8x15xf32> -> vector<8x16xf32>
    %31 = vector.broadcast %19 : vector<1x16xf32> to vector<8x16xf32>
    %32 = arith.mulf %30, %31 : vector<8x16xf32>
    %33 = arith.addf %27, %32 : vector<8x16xf32>
    %c0_26 = arith.constant 0 : index
    %c0_27 = arith.constant 0 : index
    %c0_28 = arith.constant 0 : index
    %34 = vector.load %arg10[%c0_26, %c0_27, %c0_28] : memref<3x1x16xf32, #tpu.memory_space<vmem>>, vector<1x1x16xf32>
    %35 = vector.shape_cast %34 : vector<1x1x16xf32> to vector<1x16xf32>
    %c1_29 = arith.constant 1 : index
    %c0_30 = arith.constant 0 : index
    %c0_31 = arith.constant 0 : index
    %36 = vector.load %arg10[%c1_29, %c0_30, %c0_31] : memref<3x1x16xf32, #tpu.memory_space<vmem>>, vector<1x1x16xf32>
    %37 = vector.shape_cast %36 : vector<1x1x16xf32> to vector<1x16xf32>
    %c2_32 = arith.constant 2 : index
    %c0_33 = arith.constant 0 : index
    %c0_34 = arith.constant 0 : index
    %38 = vector.load %arg10[%c2_32, %c0_33, %c0_34] : memref<3x1x16xf32, #tpu.memory_space<vmem>>, vector<1x1x16xf32>
    %39 = vector.shape_cast %38 : vector<1x1x16xf32> to vector<1x16xf32>
    %40 = vector.broadcast %35 : vector<1x16xf32> to vector<8x16xf32>
    %41 = arith.mulf %11, %40 : vector<8x16xf32>
    %42 = vector.extract_strided_slice %11 {offsets = [0, 1], sizes = [8, 15], strides = [1, 1]} : vector<8x16xf32> to vector<8x15xf32>
    %43 = vector.extract_strided_slice %11 {offsets = [0, 0], sizes = [8, 1], strides = [1, 1]} : vector<8x16xf32> to vector<8x1xf32>
    %44 = tpu.concatenate %42, %43 in 1 : vector<8x15xf32>, vector<8x1xf32> -> vector<8x16xf32>
    %45 = vector.broadcast %37 : vector<1x16xf32> to vector<8x16xf32>
    %46 = arith.mulf %44, %45 : vector<8x16xf32>
    %47 = arith.addf %41, %46 : vector<8x16xf32>
    %48 = vector.extract_strided_slice %11 {offsets = [0, 15], sizes = [8, 1], strides = [1, 1]} : vector<8x16xf32> to vector<8x1xf32>
    %49 = vector.extract_strided_slice %11 {offsets = [0, 0], sizes = [8, 15], strides = [1, 1]} : vector<8x16xf32> to vector<8x15xf32>
    %50 = tpu.concatenate %48, %49 in 1 : vector<8x1xf32>, vector<8x15xf32> -> vector<8x16xf32>
    %51 = vector.broadcast %39 : vector<1x16xf32> to vector<8x16xf32>
    %52 = arith.mulf %50, %51 : vector<8x16xf32>
    %53 = arith.addf %47, %52 : vector<8x16xf32>
    %54 = vector.extract_strided_slice %3 {offsets = [0, 0], sizes = [4, 8], strides = [1, 1]} : vector<8x8xf32> to vector<4x8xf32>
    %55 = vector.shape_cast %54 : vector<4x8xf32> to vector<4x8x1xf32>
    %56 = vector.extract_strided_slice %33 {offsets = [0, 0], sizes = [8, 8], strides = [1, 1]} : vector<8x16xf32> to vector<8x8xf32>
    %57 = vector.shape_cast %56 : vector<8x8xf32> to vector<1x8x8xf32>
    %58 = vector.broadcast %55 : vector<4x8x1xf32> to vector<4x8x8xf32>
    %59 = vector.broadcast %57 : vector<1x8x8xf32> to vector<4x8x8xf32>
    %60 = arith.mulf %58, %59 : vector<4x8x8xf32>
    %61 = vector.extract_strided_slice %3 {offsets = [4, 0], sizes = [4, 8], strides = [1, 1]} : vector<8x8xf32> to vector<4x8xf32>
    %62 = vector.shape_cast %61 : vector<4x8xf32> to vector<4x8x1xf32>
    %63 = vector.extract_strided_slice %33 {offsets = [0, 8], sizes = [8, 8], strides = [1, 1]} : vector<8x16xf32> to vector<8x8xf32>
    %64 = vector.shape_cast %63 : vector<8x8xf32> to vector<1x8x8xf32>
    %65 = vector.broadcast %62 : vector<4x8x1xf32> to vector<4x8x8xf32>
    %66 = vector.broadcast %64 : vector<1x8x8xf32> to vector<4x8x8xf32>
    %67 = arith.mulf %65, %66 : vector<4x8x8xf32>
    %68 = arith.addf %60, %67 : vector<4x8x8xf32>
    %69 = arith.truncf %68 : vector<4x8x8xf32> to vector<4x8x8xbf16>
    %c0_35 = arith.constant 0 : index
    %c0_36 = arith.constant 0 : index
    %c0_37 = arith.constant 0 : index
    %c0_38 = arith.constant 0 : index
    %70 = vector.load %arg11[%c0_35, %c0_36, %c0_37, %c0_38] : memref<1x4x8x8xbf16, #tpu.memory_space<vmem>>, vector<1x4x8x8xbf16>
    %71 = vector.shape_cast %70 : vector<1x4x8x8xbf16> to vector<4x8x8xbf16>
    %72 = vector.shape_cast %69 : vector<4x8x8xbf16> to vector<1x4x8x8xbf16>
    tpu.vector_store %arg11[%c0_35, %c0_36, %c0_37, %c0_38], %72 {strides = array<i32>} : memref<1x4x8x8xbf16, #tpu.memory_space<vmem>>, vector<1x4x8x8xbf16>,
    %73 = vector.extract_strided_slice %5 {offsets = [0, 0], sizes = [4, 8], strides = [1, 1]} : vector<8x8xf32> to vector<4x8xf32>
    %74 = vector.shape_cast %73 : vector<4x8xf32> to vector<4x8x1xf32>
    %75 = vector.extract_strided_slice %53 {offsets = [0, 0], sizes = [8, 8], strides = [1, 1]} : vector<8x16xf32> to vector<8x8xf32>
    %76 = vector.shape_cast %75 : vector<8x8xf32> to vector<1x8x8xf32>
    %77 = vector.broadcast %74 : vector<4x8x1xf32> to vector<4x8x8xf32>
    %78 = vector.broadcast %76 : vector<1x8x8xf32> to vector<4x8x8xf32>
    %79 = arith.mulf %77, %78 : vector<4x8x8xf32>
    %80 = vector.extract_strided_slice %5 {offsets = [4, 0], sizes = [4, 8], strides = [1, 1]} : vector<8x8xf32> to vector<4x8xf32>
    %81 = vector.shape_cast %80 : vector<4x8xf32> to vector<4x8x1xf32>
    %82 = vector.extract_strided_slice %53 {offsets = [0, 8], sizes = [8, 8], strides = [1, 1]} : vector<8x16xf32> to vector<8x8xf32>
    %83 = vector.shape_cast %82 : vector<8x8xf32> to vector<1x8x8xf32>
    %84 = vector.broadcast %81 : vector<4x8x1xf32> to vector<4x8x8xf32>
    %85 = vector.broadcast %83 : vector<1x8x8xf32> to vector<4x8x8xf32>
    %86 = arith.mulf %84, %85 : vector<4x8x8xf32>
    %87 = arith.addf %79, %86 : vector<4x8x8xf32>
    %88 = arith.truncf %87 : vector<4x8x8xf32> to vector<4x8x8xbf16>
    %c0_39 = arith.constant 0 : index
    %c0_40 = arith.constant 0 : index
    %c0_41 = arith.constant 0 : index
    %c0_42 = arith.constant 0 : index
    %89 = vector.load %arg12[%c0_39, %c0_40, %c0_41, %c0_42] : memref<1x4x8x8xbf16, #tpu.memory_space<vmem>>, vector<1x4x8x8xbf16>
    %90 = vector.shape_cast %89 : vector<1x4x8x8xbf16> to vector<4x8x8xbf16>
    %91 = vector.shape_cast %88 : vector<4x8x8xbf16> to vector<1x4x8x8xbf16>
    tpu.vector_store %arg12[%c0_39, %c0_40, %c0_41, %c0_42], %91 {strides = array<i32>} : memref<1x4x8x8xbf16, #tpu.memory_space<vmem>>, vector<1x4x8x8xbf16>,
    %92 = vector.extract_strided_slice %7 {offsets = [0, 0], sizes = [4, 8], strides = [1, 1]} : vector<8x8xf32> to vector<4x8xf32>
    %93 = vector.shape_cast %92 : vector<4x8xf32> to vector<4x8x1xf32>
    %94 = vector.extract_strided_slice %13 {offsets = [0, 0], sizes = [8, 8], strides = [1, 1]} : vector<8x16xf32> to vector<8x8xf32>
    %95 = vector.shape_cast %94 : vector<8x8xf32> to vector<1x8x8xf32>
    %96 = vector.broadcast %93 : vector<4x8x1xf32> to vector<4x8x8xf32>
    %97 = vector.broadcast %95 : vector<1x8x8xf32> to vector<4x8x8xf32>
    %98 = arith.mulf %96, %97 : vector<4x8x8xf32>
    %99 = vector.extract_strided_slice %7 {offsets = [4, 0], sizes = [4, 8], strides = [1, 1]} : vector<8x8xf32> to vector<4x8xf32>
    %100 = vector.shape_cast %99 : vector<4x8xf32> to vector<4x8x1xf32>
    %101 = vector.extract_strided_slice %13 {offsets = [0, 8], sizes = [8, 8], strides = [1, 1]} : vector<8x16xf32> to vector<8x8xf32>
    %102 = vector.shape_cast %101 : vector<8x8xf32> to vector<1x8x8xf32>
    %103 = vector.broadcast %100 : vector<4x8x1xf32> to vector<4x8x8xf32>
    %104 = vector.broadcast %102 : vector<1x8x8xf32> to vector<4x8x8xf32>
    %105 = arith.mulf %103, %104 : vector<4x8x8xf32>
    %106 = arith.addf %98, %105 : vector<4x8x8xf32>
    %107 = arith.truncf %106 : vector<4x8x8xf32> to vector<4x8x8xbf16>
    %c0_43 = arith.constant 0 : index
    %c0_44 = arith.constant 0 : index
    %c0_45 = arith.constant 0 : index
    %c0_46 = arith.constant 0 : index
    %108 = vector.load %arg13[%c0_43, %c0_44, %c0_45, %c0_46] : memref<1x4x8x8xbf16, #tpu.memory_space<vmem>>, vector<1x4x8x8xbf16>
    %109 = vector.shape_cast %108 : vector<1x4x8x8xbf16> to vector<4x8x8xbf16>
    %110 = vector.shape_cast %107 : vector<4x8x8xbf16> to vector<1x4x8x8xbf16>
    tpu.vector_store %arg13[%c0_43, %c0_44, %c0_45, %c0_46], %110 {strides = array<i32>} : memref<1x4x8x8xbf16, #tpu.memory_space<vmem>>, vector<1x4x8x8xbf16>,
    return
  }
  func.func @transform_0(%arg0: i32, %arg1: i32) -> (i32, i32, i32) {
    %c0_i32 = arith.constant 0 : i32
    %c0_i32_0 = arith.constant 0 : i32
    return %arg0, %arg1, %c0_i32 : i32, i32, i32
  }
  func.func @transform_1(%arg0: i32, %arg1: i32) -> (i32, i32) {
    %c0_i32 = arith.constant 0 : i32
    %c0_i32_0 = arith.constant 0 : i32
    %c0_i32_1 = arith.constant 0 : i32
    return %c0_i32, %c0_i32_0 : i32, i32
  }
  func.func @transform_2(%arg0: i32, %arg1: i32) -> (i32, i32) {
    %c0_i32 = arith.constant 0 : i32
    %c0_i32_0 = arith.constant 0 : i32
    %c0_i32_1 = arith.constant 0 : i32
    return %c0_i32, %c0_i32_0 : i32, i32
  }
  func.func @transform_3(%arg0: i32, %arg1: i32) -> (i32, i32) {
    %c0_i32 = arith.constant 0 : i32
    %c0_i32_0 = arith.constant 0 : i32
    %c0_i32_1 = arith.constant 0 : i32
    return %c0_i32, %c0_i32_0 : i32, i32
  }
  func.func @transform_4(%arg0: i32, %arg1: i32) -> (i32, i32) {
    %c0_i32 = arith.constant 0 : i32
    %c0_i32_0 = arith.constant 0 : i32
    %c0_i32_1 = arith.constant 0 : i32
    return %c0_i32, %c0_i32_0 : i32, i32
  }
  func.func @transform_5(%arg0: i32, %arg1: i32) -> (i32, i32) {
    %c0_i32 = arith.constant 0 : i32
    %c0_i32_0 = arith.constant 0 : i32
    %c0_i32_1 = arith.constant 0 : i32
    return %c0_i32, %c0_i32_0 : i32, i32
  }
  func.func @transform_6(%arg0: i32, %arg1: i32) -> (i32, i32) {
    %c0_i32 = arith.constant 0 : i32
    %c0_i32_0 = arith.constant 0 : i32
    %c0_i32_1 = arith.constant 0 : i32
    return %c0_i32, %c0_i32_0 : i32, i32
  }
  func.func @transform_7(%arg0: i32, %arg1: i32) -> (i32, i32, i32) {
    %c0_i32 = arith.constant 0 : i32
    %c0_i32_0 = arith.constant 0 : i32
    %c0_i32_1 = arith.constant 0 : i32
    %c0_i32_2 = arith.constant 0 : i32
    return %c0_i32, %c0_i32_0, %c0_i32_1 : i32, i32, i32
  }
  func.func @transform_8(%arg0: i32, %arg1: i32) -> (i32, i32, i32) {
    %c0_i32 = arith.constant 0 : i32
    %c0_i32_0 = arith.constant 0 : i32
    %c0_i32_1 = arith.constant 0 : i32
    %c0_i32_2 = arith.constant 0 : i32
    return %c0_i32, %c0_i32_0, %c0_i32_1 : i32, i32, i32
  }
  func.func @transform_9(%arg0: i32, %arg1: i32) -> (i32, i32, i32, i32) {
    %c0_i32 = arith.constant 0 : i32
    %c0_i32_0 = arith.constant 0 : i32
    %c0_i32_1 = arith.constant 0 : i32
    return %arg0, %c0_i32, %arg1, %c0_i32_0 : i32, i32, i32, i32
  }
  func.func @transform_10(%arg0: i32, %arg1: i32) -> (i32, i32, i32, i32) {
    %c0_i32 = arith.constant 0 : i32
    %c0_i32_0 = arith.constant 0 : i32
    %c0_i32_1 = arith.constant 0 : i32
    return %arg0, %c0_i32, %arg1, %c0_i32_0 : i32, i32, i32, i32
  }
  func.func @transform_11(%arg0: i32, %arg1: i32) -> (i32, i32, i32, i32) {
    %c0_i32 = arith.constant 0 : i32
    %c0_i32_0 = arith.constant 0 : i32
    %c0_i32_1 = arith.constant 0 : i32
    return %arg0, %c0_i32, %arg1, %c0_i32_0 : i32, i32, i32, i32
  }
}

</mosaic_0001>

<bundles_post_ra>
// kernel: tpu_custom_call.1
= control target key start
LH: loop header
LB: loop body
LE: loop exit
PB: predicated region body
PF: predicated region fallthrough
CT: control target
= control target key end

     0   :  { %s2081_s0 = inlined_call_operand.vmem [shape: bf16[2,8,32], index: 0, kind: input, shape index: {}]   ;;  %s2082_s1 = inlined_call_operand.vmem [shape: bf16[8,32], index: 1, kind: input, shape index: {}]   ;;  %s2083_s2 = inlined_call_operand.vmem [shape: bf16[32,16], index: 2, kind: input, shape index: {}]   ;;  %s2084_s3 = inlined_call_operand.vmem [shape: bf16[8,32], index: 3, kind: input, shape index: {}]   ;;  %s2085_s4 = inlined_call_operand.vmem [shape: bf16[32,16], index: 4, kind: input, shape index: {}]   ;;  %s2086_s5 = inlined_call_operand.vmem [shape: bf16[8,32], index: 5, kind: input, shape index: {}]   ;;  %s2087_s6 = inlined_call_operand.vmem [shape: bf16[32,16], index: 6, kind: input, shape index: {}]   ;;  %s2088_s7 = inlined_call_operand.vmem [shape: f32[3,1,16], index: 7, kind: input, shape index: {}]   ;;  %s2089_s8 = inlined_call_operand.vmem [shape: f32[3,1,16], index: 8, kind: input, shape index: {}]   ;;  %s2090_s9 = inlined_call_operand.hbm [shape: bf16[2,4,8,8], index: 9, kind: output, shape index: {0}]   ;;  %s2091_s10 = inlined_call_operand.hbm [shape: bf16[2,4,8,8], index: 10, kind: output, shape index: {1}]   ;;  %s2092_s11 = inlined_call_operand.hbm [shape: bf16[2,4,8,8], index: 11, kind: output, shape index: {2}]  }
   0x1   :  { %2098 = sst [smem:[#allocation10_spill]] %s2081_s0 }
   0x2   :  { %2099 = sst [smem:[#allocation11_spill]] %s2082_s1 }
   0x3   :  { %2100 = sst [smem:[#allocation12_spill]] %s2083_s2 }
   0x4   :  { %17 = vsyncpa [#allocation3], 0 }
   0x5   :  { %19 = vsyncpa [#allocation3 + $0x1], 0 }
   0x6   :  { %20 = vsyncpa [#allocation5], 0 }
   0x7   :  { %22 = vsyncpa [#allocation5 + $0x1], 0  ;;  %s1693_s17 = smov 0   ;;  %s1695_s18 = smov 0  }
   0x8   :  { %s1697_s19 = smov 0   ;;  %s1699_s20 = smov 0  }
   0x9   :  { %s1701_s21 = smov 0   ;;  %s1703_s22 = smov 0  }
   0xa LB: > { %s2094_s23 = sadd.s32 4294967295, %s1619_s22   ;;  %s2093_s24 = sadd.s32 4294967294, %s1619_s22   ;;  %s1619_s22 = sphi %s1703_s22, %s28_s22   ;;  %s1615_s21 = sphi %s1701_s21, %s2118_s21   ;;  %s1611_s20 = sphi %s1699_s20, %s2117_s20   ;;  %s1607_s19 = sphi %s1697_s19, %s2116_s19   ;;  %s1603_s18 = sphi %s1695_s18, %s2115_s18   ;;  %s1599_s17 = sphi %s1693_s17, %s2114_s17  }
   0xb   : > { %s40_s25 = sadd.s32 1, %s1615_s21  ;;  %s245_s26 = sadd.s32 1, %s1607_s19 }
   0xc   : > { %p42_p0 = scmp.ge.s32.totalorder %s40_s25, 2  ;;  %p255_p1 = scmp.ne.s32.totalorder %s1607_s19, %s1603_s18 }
   0xd   : > { %p256_p2 = scmp.eq.s32.totalorder %s2094_s23, 1  ;;  %p261_p3 = scmp.ne.s32.totalorder %s1603_s18, %s1599_s17 }
   0xe   : > { %s2120_s25 = smov (%p42_p0, %s40_s25), 0  ;;  %p262_p5 = scmp.eq.s32.totalorder %s2093_s24, 1 }
   0xf   : > { %2101 = sst [smem:[#allocation9_spill]] %s2120_s25  ;;  %p1735_p4 = por %p256_p2, %p255_p1 }
  0x10   : > { %s240_s28 = ssub.s32 %s1615_s21, %s2120_s25  ;;  %p1303_p6 = scmp.ge.s32.totalorder %s1619_s22, 1 }
  0x11   : > { %p243_p7 = scmp.eq.s32.totalorder %s240_s28, 0  ;;  %p1744_p8 = por %p262_p5, %p261_p3 }
  0x12   : > { %p370_p9 = scmp.lt.s32.totalorder %s1619_s22, 3 }
  0x13   : > { %s1750_s30 = scalar_select %p243_p7, %s1607_s19, %s245_s26  }
  0x14   : > { %p371_p10 = pnand %p1303_p6, %p370_p9 }
  0x15   : > { %p422_p11 = scmp.lt.s32.totalorder (!%p371_p10), %s1611_s20, 1  ;;  %v1621_v0 = vmov (!%p371_p10), 0.0   ;;  %vm1622_vm0 = vmmov (!%p371_p10), 0   ;;  %vm432_vm1 = vcmask (!%p371_p10), 261120   ;;  %s2104_s0 = sld [smem:[#allocation10_spill]] (!%p371_p10)  ;;  %v1477_v8 = vld [vmem:[%s2085_s4] sm:$0xff] (!%p371_p10)   ;;  %v823_v12 = vlaneseq (!%p371_p10) }
  0x16   : > { %374 = sbr.rel (%p371_p10) target bundleno = 597 (0x255), region = 56  ;;  %1365 = vmatprep.subr.bf16.mxu1 (!%p371_p10), %v1621_v0  ;;  %1359 = vmatprep.subr.bf16.mxu0 (!%p371_p10), %v1621_v0  ;;  %v479_v3 = vld [vmem:[%s2084_s3] sm:$0xf] (!%p371_p10)  ;;  %s2105_s1 = sld [smem:[#allocation11_spill]] (!%p371_p10)  ;;  %v1478_v10 = vld [vmem:[%s2085_s4 + $0x8] sm:$0xff] (!%p371_p10)   ;;  %vm754_vm2 = vcmask (!%p371_p10), 121856  }
  0x17   : > { %1367 = vmatprep.mubr.msk.bf16.mxu1 (!%p371_p10), %vm1622_vm0, %v1621_v0  ;;  %1361 = vmatprep.mubr.msk.bf16.mxu0 (!%p371_p10), %vm1622_vm0, %v1621_v0  ;;  %s2106_s2 = sld [smem:[#allocation12_spill]] (!%p371_p10)  ;;  %v523_v7 = vld [vmem:[%s2086_s5] sm:$0xf] (!%p371_p10)  ;;  %v1480_v11 = vld [vmem:[%s2087_s6 + $0x8] sm:$0xff] (!%p371_p10)   ;;  %v1797_v13 = vshrl.u32 (!%p371_p10), %v823_v12, 7  ;;  %s1623_s23 = smov (!%p371_p10), 127  }
  0x18   : > { %v1479_v9 = vld [vmem:[%s2087_s6] sm:$0xff] (!%p371_p10)   ;;  %s1624_s24 = smov (!%p371_p10), 113   ;;  %s1625_s25 = smov (!%p371_p10), 15   ;;  %vm770_vm3 = vcmask (!%p371_p10), 7168   ;;  %vm911_vm4 = vcmask (!%p371_p10), 60416  }
  0x19   : > { %v864_v14 = vsub.s32 (!%p371_p10), 5, %v1797_v13  ;;  %v857_v15 = vsub.s32 (!%p371_p10), 4, %v1797_v13  ;;  %v878_v22 = vsub.s32 (!%p371_p10), 7, %v1797_v13  ;;  %v871_v23 = vsub.s32 (!%p371_p10), 6, %v1797_v13  ;;  %s1626_s15 = smov (!%p371_p10), 1   ;;  %s1627_s28 = smov (!%p371_p10), 120  }
  0x1a   : > { %v832_v54 = vsub.s32 (!%p371_p10), 1, %v1797_v13  ;;  %v825_v55 = vsub.s32 (!%p371_p10), 0, %v1797_v13  ;;  %v846_v58 = vsub.s32 (!%p371_p10), 3, %v1797_v13  ;;  %v839_v59 = vsub.s32 (!%p371_p10), 2, %v1797_v13 }
  0x1c   : > { %v431_v4 = vld [vmem:[%s2105_s1] sm:$0xf] (!%p371_p10) }
  0x1d   : > { %s423_s12 = scalar_select %p422_p11, %s1611_s20, 1  ;;  %v1475_v5 = vld [vmem:[%s2106_s2] sm:$0xff]   ;;  %v1476_v6 = vld [vmem:[%s2106_s2 + $0x8] sm:$0xff]  }
  0x1f   : > { %s1307_s13 = sshll.u32 %s423_s12, 2  ;;  %s405_s12 = sand.u32 1, %s1603_s18  }
  0x20   : > { %s428_s16 = scalar_lea.vmem %s2104_s0, %s1307_s13  ;;  %s1904_s13 = sshll.u32 %s405_s12, 4 }
  0x21   : > { %v430_v1 = vld [vmem:[%s428_s16] sm:$0xf]  ;;  %s1909_s14 = scalar_lea.vmem [#allocation6], %s1904_s13  ;;  %s1937_s26 = scalar_lea.sflag [#allocation3], %s405_s12 }
  0x22   : > { %v437_v2 = vsel %vm432_vm1, %v430_v1, 0 }
  0x23   : > { %1366 = vmatpush3.bf16.xpose.msra.mxu1 %v437_v2  ;;  %1360 = vmatpush3.bf16.xpose.msra.mxu0 %v437_v2 }
  0x24   : > { %1371 = vmatprep.subr.bf16.mxu0 %v1621_v0  ;;  %1377 = vmatprep.subr.bf16.mxu1 %v1621_v0 }
  0x2a   : > { %1368 = vmatmul.mubr.msk.bf16.vlgmr.msra.gmra.mrb[0].mxu1 %vm432_vm1, %v479_v3  ;;  %1362 = vmatmul.mubr.msk.bf16.vlgmr.msra.gmra.mrb[0].mxu0 %vm432_vm1, %v431_v4 }
  0x2b   : > { %1372 = vmatpush3.bf16.xpose.msra.mxu0 %v437_v2  ;;  %1378 = vmatpush3.bf16.msra.mxu1 %v1475_v5 }
  0x2c   : > { %1373 = vmatprep.mubr.msk.bf16.mxu0 %vm1622_vm0, %v1621_v0  ;;  %1379 = vmatprep.subr.bf16.mxu1 %v1621_v0 }
  0x2d   : > { %1385 = vmatprep.subr.bf16.mxu0 %v1621_v0  ;;  %1381 = vmatprep.mubr.msk.bf16.mxu1 %vm1622_vm0, %v1621_v0 }
  0x2f   : > { %1380 = vmatpush3.bf16.msra.mxu1 %v1476_v6 }
  0x30   : > { %1393 = vmatprep.subr.bf16.mxu1 %v1621_v0 }
  0x32   : > { %1374 = vmatmul.mubr.msk.bf16.vlgmr.msra.gmra.mrb[4].mxu0 %vm432_vm1, %v523_v7  ;;  %1382 = vmatmul.mubr.msk.bf16.vlgmr.msra.gmra.mrb[4].mxu1 %vm432_vm1, %v430_v1 }
  0x33   : > { %1386 = vmatpush3.bf16.msra.mxu0 %v1477_v8  ;;  %1389 = vmatprep.mubr.msk.bf16.mxu0 %vm1622_vm0, %v1621_v0 }
  0x34   : > { %1387 = vmatprep.subr.bf16.mxu0 %v1621_v0  ;;  %1394 = vmatpush3.bf16.msra.mxu1 %v1479_v9 }
  0x35   : > { %1395 = vmatprep.subr.bf16.mxu1 %v1621_v0  ;;  %1397 = vmatprep.mubr.msk.bf16.mxu1 %vm1622_vm0, %v1621_v0 }
  0x37   : > { %1388 = vmatpush3.bf16.msra.mxu0 %v1478_v10 }
  0x38   : > { %1396 = vmatpush3.bf16.msra.mxu1 %v1480_v11 }
  0x3a   : > { %1390 = vmatmul.mubr.msk.bf16.vlgmr.msra.gmra.mrb[8].mxu0 %vm432_vm1, %v430_v1 }
  0x3b   : > { %1398 = vmatmul.mubr.msk.bf16.vlgmr.msra.gmra.mrb[8].mxu1 %vm432_vm1, %v430_v1 }
  0xfd   : > { %v1801_v16 = vpop.f32.mrb[0].mxu1  ;;  %v1803_v17 = vpop.f32.mrb[0].mxu0 }
  0xfe   : > { %v1369_v18 = vpop.f32.mrb[1].mxu1  ;;  %v958_v19 = vrot.slane %v1801_v16, %v864_v14  ;;  %v951_v20 = vrot.slane %v1801_v16, %v857_v15  ;;  %v1363_v21 = vpop.f32.mrb[1].mxu0  ;;  %v972_v28 = vrot.slane %v1801_v16, %v878_v22  ;;  %v965_v29 = vrot.slane %v1801_v16, %v871_v23 }
  0xff   : > { %v520_v24 = vpop.f32.mrb[2].mxu1  ;;  %v476_v25 = vpop.f32.mrb[2].mxu0  ;;  %v865_v32 = vrot.slane %v1803_v17, %v864_v14  ;;  %v858_v33 = vrot.slane %v1803_v17, %v857_v15  ;;  %v879_v40 = vrot.slane %v1803_v17, %v878_v22  ;;  %v872_v41 = vrot.slane %v1803_v17, %v871_v23  ;;  %v1323_v18 = vld [vmem:[%s2088_s7 + $0x1] ss:$0 sm:$0xff] }
 0x100   : > { %960 = vbcast.lane.b32.xlu1 %v958_v19, 256  ;;  %953 = vbcast.lane.b32.xlu0 %v951_v20, 256  ;;  %v1370_v26 = vpop.f32.mrb[3].mxu1  ;;  %v1364_v27 = vpop.f32.mrb[3].mxu0  ;;  %v926_v56 = vrot.slane %v1801_v16, %v832_v54  ;;  %v919_v57 = vrot.slane %v1801_v16, %v825_v55  ;;  %v940_v60 = vrot.slane %v1801_v16, %v846_v58 }
 0x101   : > { %v933_v61 = vrot.slane %v1801_v16, %v839_v59  ;;  %v833_v62 = vrot.slane %v1803_v17, %v832_v54  ;;  %v826_v63 = vrot.slane %v1803_v17, %v825_v55  ;;  %v847_v0 = vrot.slane %v1803_v17, %v846_v58 }
 0x102   : > { %v840_v1 = vrot.slane %v1803_v17, %v839_v59 }
 0x104   : > { %974 = vbcast.lane.b32.xlu1 %v972_v28, 256  ;;  %967 = vbcast.lane.b32.xlu0 %v965_v29, 256 }
 0x105   : > { %v1811_v30 = vpop.f32.mrb[4].mxu0  ;;  %v1813_v31 = vpop.f32.mrb[4].mxu1 }
 0x106   : > { %v1375_v34 = vpop.f32.mrb[5].mxu0  ;;  %v1383_v35 = vpop.f32.mrb[5].mxu1  ;;  %v1050_v50 = vrot.slane %v1811_v30, %v864_v14  ;;  %v1043_v51 = vrot.slane %v1811_v30, %v857_v15  ;;  %v1064_v52 = vrot.slane %v1811_v30, %v878_v22  ;;  %v1057_v53 = vrot.slane %v1811_v30, %v871_v23  ;;  %v1322_v22 = vld [vmem:[%s2088_s7] ss:$0 sm:$0xff]  ;;  %v1324_v23 = vld [vmem:[%s2088_s7 + $0x2] ss:$0 sm:$0xff] }
 0x107   : > { %v564_v36 = vpop.f32.mrb[6].mxu0  ;;  %v620_v37 = vpop.f32.mrb[6].mxu1  ;;  %v1018_v2 = vrot.slane %v1811_v30, %v832_v54  ;;  %v1011_v3 = vrot.slane %v1811_v30, %v825_v55  ;;  %v1032_v4 = vrot.slane %v1811_v30, %v846_v58  ;;  %v1025_v5 = vrot.slane %v1811_v30, %v839_v59 }
 0x108   : > { %867 = vbcast.lane.b32.xlu1 %v865_v32, 256  ;;  %860 = vbcast.lane.b32.xlu0 %v858_v33, 256  ;;  %v1376_v38 = vpop.f32.mrb[7].mxu0  ;;  %v1384_v39 = vpop.f32.mrb[7].mxu1  ;;  %v746_v28 = vmul.f32 %v1322_v22, %v1813_v31  ;;  %v1328_v32 = vld [vmem:[%s2089_s8 + $0x1] ss:$0 sm:$0xff] }
 0x109   : > { %v1329_v39 = vld [vmem:[%s2089_s8 + $0x2] ss:$0 sm:$0xff] }
 0x10c   : > { %881 = vbcast.lane.b32.xlu1 %v879_v40, 256  ;;  %874 = vbcast.lane.b32.xlu0 %v872_v41, 256 }
 0x10d   : > { %v1819_v42 = vpop.f32.mrb[8].mxu0 }
 0x10e   : > { %v1391_v43 = vpop.f32.mrb[9].mxu0  ;;  %v1823_v46 = vpop.f32.mrb[8].mxu1 }
 0x10f   : > { %v676_v44 = vpop.f32.mrb[10].mxu0  ;;  %v1399_v47 = vpop.f32.mrb[9].mxu1 }
 0x110   : > { %748 = vrot.lane.b32.xlu1 %v1813_v31, %s1623_s23  ;;  %764 = vrot.lane.b32.xlu0 %v1813_v31, %s1624_s24  ;;  %v1392_v45 = vpop.f32.mrb[11].mxu0  ;;  %v732_v48 = vpop.f32.mrb[10].mxu1 }
 0x111   : > { %v1400_v49 = vpop.f32.mrb[11].mxu1 }
 0x114   : > { %751 = vrot.lane.b32.xlu1 %v1813_v31, %s1625_s25  ;;  %793 = vrot.lane.b32.xlu0 %v1819_v42, %s1623_s23  ;;  %s407_s23 = scalar_lea.vmem [#allocation2], %s1904_s13 }
 0x118   : > { %767 = vrot.lane.b32.xlu1 %v1813_v31, %s1626_s15  ;;  %796 = vrot.lane.b32.xlu0 %v1819_v42, %s1625_s25  ;;  %v1327_v31 = vld [vmem:[%s2089_s8] ss:$0 sm:$0xff]  ;;  %s1919_s25 = sshll.u32 %s1611_s20, 8  ;;  %s1628_s20 = smov [#allocation2]  }
 0x119   : > { %v791_v43 = vmul.f32 %v1327_v31, %v1819_v42  ;;  %s1931_s16 = scalar_lea.hbm %s2090_s9, %s1919_s25 }
 0x11c   : > { %811 = vrot.lane.b32.xlu1 %v1819_v42, %s1626_s15  ;;  %808 = vrot.lane.b32.xlu0 %v1819_v42, %s1624_s24  ;;  %s1125_s24 = sshll.u32 %s407_s23, 4  ;;  %s1485_s15 = sshll.u32 %s1628_s20, 4  ;;  %s1923_s24 = int_to_ptr.vmem [resolvable:$true] %s1125_s24  ;;  %s1486_s15 = int_to_ptr.vmem [resolvable:$false] %s1485_s15 }
 0x11d   : > { %s1487_s0 = scalar_lea.vmem %s1486_s15, 512  ;;  %p1488_p1 = scmp.lt.s32.totalorder %s1923_s24, %s1486_s15 }
 0x120   : > { %1052 = vbcast.lane.b32.xlu1 %v1050_v50, 256  ;;  %1045 = vbcast.lane.b32.xlu0 %v1043_v51, 256 }
 0x124   : > { %1066 = vbcast.lane.b32.xlu1 %v1064_v52, 256  ;;  %1059 = vbcast.lane.b32.xlu0 %v1057_v53, 256 }
 0x128   : > { %928 = vbcast.lane.b32.xlu1 %v926_v56, 256  ;;  %921 = vbcast.lane.b32.xlu0 %v919_v57, 256 }
 0x12c   : > { %942 = vbcast.lane.b32.xlu1 %v940_v60, 256  ;;  %935 = vbcast.lane.b32.xlu0 %v933_v61, 256 }
 0x130   : > { %835 = vbcast.lane.b32.xlu1 %v833_v62, 256  ;;  %828 = vbcast.lane.b32.xlu0 %v826_v63, 256 }
 0x134   : > { %849 = vbcast.lane.b32.xlu1 %v847_v0, 256  ;;  %842 = vbcast.lane.b32.xlu0 %v840_v1, 256 }
 0x138   : > { %1020 = vbcast.lane.b32.xlu1 %v1018_v2, 256  ;;  %1013 = vbcast.lane.b32.xlu0 %v1011_v3, 256 }
 0x13c   : > { %1034 = vbcast.lane.b32.xlu1 %v1032_v4, 256  ;;  %1027 = vbcast.lane.b32.xlu0 %v1025_v5, 256 }
 0x172   : > { %v961_v6 = vpop.permute.xlu1 %960  ;;  %v954_v7 = vpop.permute.xlu0 %953 }
 0x176   : > { %v975_v8 = vpop.permute.xlu1 %974  ;;  %v968_v9 = vpop.permute.xlu0 %967 }
 0x17a   : > { %v868_v10 = vpop.permute.xlu1 %867  ;;  %v861_v11 = vpop.permute.xlu0 %860 }
 0x17e   : > { %v882_v12 = vpop.permute.xlu1 %881  ;;  %v875_v13 = vpop.permute.xlu0 %874 }
 0x182   : > { %v749_v14 = vpop.permute.xlu1 %748  ;;  %v765_v15 = vpop.permute.xlu0 %764 }
 0x186   : > { %v752_v16 = vpop.permute.xlu1 %751  ;;  %v794_v17 = vpop.permute.xlu0 %793 }
 0x187   : > { %v755_v19 = vsel %vm754_vm2, %v749_v14, %v752_v16 }
 0x188   : > { %v762_v25 = vmul.f32 %v1323_v18, %v755_v19 }
 0x18a   : > { %v768_v20 = vpop.permute.xlu1 %767  ;;  %v797_v21 = vpop.permute.xlu0 %796  ;;  %v763_v30 = vadd.f32 %v762_v25, %v746_v28 }
 0x18b   : > { %v771_v24 = vsel %vm770_vm3, %v765_v15, %v768_v20  ;;  %v799_v33 = vsel %vm754_vm2, %v794_v17, %v797_v21 }
 0x18c   : > { %v778_v29 = vmul.f32 %v1324_v23, %v771_v24  ;;  %v806_v41 = vmul.f32 %v1328_v32, %v799_v33 }
 0x18e   : > { %v812_v26 = vpop.permute.xlu1 %811  ;;  %v809_v27 = vpop.permute.xlu0 %808  ;;  %v1867_v36 = vadd.f32 %v778_v29, %v763_v30  ;;  %v807_v48 = vadd.f32 %v806_v41, %v791_v43 }
 0x18f   : > { %v814_v40 = vsel %vm770_vm3, %v809_v27, %v812_v26 }
 0x190   : > { %v821_v44 = vmul.f32 %v1329_v39, %v814_v40  ;;  %v884_v45 = vmul.f32 %v868_v10, %v1867_v36  ;;  %v883_v47 = vmul.f32 %v861_v11, %v1867_v36  ;;  %v886_v50 = vmul.f32 %v882_v12, %v1867_v36 }
 0x191   : > { %v885_v51 = vmul.f32 %v875_v13, %v1867_v36 }
 0x192   : > { %v1053_v34 = vpop.permute.xlu1 %1052  ;;  %v1046_v35 = vpop.permute.xlu0 %1045  ;;  %v1881_v49 = vadd.f32 %v821_v44, %v807_v48 }
 0x193   : > { %v1069_v37 = vmul.f32 %v1053_v34, %v1823_v46  ;;  %v1068_v38 = vmul.f32 %v1046_v35, %v1823_v46 }
 0x194   : > { %v977_v52 = vmul.f32 %v961_v6, %v1881_v49  ;;  %v976_v42 = vmul.f32 %v954_v7, %v1881_v49  ;;  %v979_v53 = vmul.f32 %v975_v8, %v1881_v49  ;;  %v978_v54 = vmul.f32 %v968_v9, %v1881_v49 }
 0x195   : > { %1078 = vrot.lane.b32.xlu1 %v1069_v37, %s1627_s28  ;;  %1076 = vrot.lane.b32.xlu0 %v1068_v38, %s1627_s28 }
 0x196   : > { %v1067_v55 = vpop.permute.xlu1 %1066  ;;  %v1060_v56 = vpop.permute.xlu0 %1059 }
 0x197   : > { %v1071_v57 = vmul.f32 %v1067_v55, %v1823_v46  ;;  %v1070_v58 = vmul.f32 %v1060_v56, %v1823_v46 }
 0x199   : > { %893 = vrot.lane.b32.xlu1 %v884_v45, %s1627_s28  ;;  %891 = vrot.lane.b32.xlu0 %v883_v47, %s1627_s28 }
 0x19a   : > { %v929_v59 = vpop.permute.xlu1 %928  ;;  %v922_v60 = vpop.permute.xlu0 %921 }
 0x19b   : > { %v945_v29 = vmul.f32 %v929_v59, %v1881_v49  ;;  %v944_v30 = vmul.f32 %v922_v60, %v1881_v49 }
 0x19d   : > { %897 = vrot.lane.b32.xlu1 %v886_v50, %s1627_s28  ;;  %895 = vrot.lane.b32.xlu0 %v885_v51, %s1627_s28 }
 0x19e   : > { %v1891_v61 = vpop.permute.xlu1 %942  ;;  %v1893_v62 = vpop.permute.xlu0 %935 }
 0x1a1   : > { %986 = vrot.lane.b32.xlu1 %v977_v52, %s1627_s28  ;;  %984 = vrot.lane.b32.xlu0 %v976_v42, %s1627_s28 }
 0x1a2   : > { %v836_v63 = vpop.permute.xlu1 %835  ;;  %v829_v0 = vpop.permute.xlu0 %828 }
 0x1a3   : > { %v852_v13 = vmul.f32 %v836_v63, %v1867_v36  ;;  %v851_v14 = vmul.f32 %v829_v0, %v1867_v36 }
 0x1a5   : > { %990 = vrot.lane.b32.xlu1 %v979_v53, %s1627_s28  ;;  %988 = vrot.lane.b32.xlu0 %v978_v54, %s1627_s28 }
 0x1a6   : > { %v850_v1 = vpop.permute.xlu1 %849  ;;  %v843_v2 = vpop.permute.xlu0 %842 }
 0x1a7   : > { %v854_v21 = vmul.f32 %v850_v1, %v1867_v36  ;;  %v853_v22 = vmul.f32 %v843_v2, %v1867_v36 }
 0x1a9   : > { %1082 = vrot.lane.b32.xlu1 %v1071_v57, %s1627_s28  ;;  %1080 = vrot.lane.b32.xlu0 %v1070_v58, %s1627_s28  ;;  %s1481_s28 = scalar_lea.vmem %s1923_s24, 256 }
 0x1aa   : > { %v1021_v3 = vpop.permute.xlu1 %1020  ;;  %v1014_v4 = vpop.permute.xlu0 %1013  ;;  %p1482_p12 = scmp.ne.s32.totalorder %s1923_s24, %s1481_s28  ;;  %p1489_p2 = scmp.lt.s32.totalorder %s1487_s0, %s1481_s28 }
 0x1ab   : > { %v1037_v7 = vmul.f32 %v1021_v3, %v1823_v46  ;;  %v1036_v8 = vmul.f32 %v1014_v4, %v1823_v46 }
 0x1ac   : > { %p1483_p13 = pnand %p1482_p12, %p1735_p4  ;;  %p1490_p3 = por %p1489_p2, %p1488_p1 }
 0x1ae   : > { %v1895_v5 = vpop.permute.xlu1 %1034  ;;  %v1897_v6 = vpop.permute.xlu0 %1027  ;;  %p1484_p0 = pneg %p1483_p13 }
 0x1b0   : > { %p1491_p5 = pnand %p1490_p3, %p1484_p0 }
 0x207   : > { %v1079_v9 = vpop.permute.xlu1 %1078  ;;  %v1077_v10 = vpop.permute.xlu0 %1076 }
 0x208   : > { %v1089_v11 = vadd.f32 %v1079_v9, %v1037_v7  ;;  %v1088_v12 = vadd.f32 %v1077_v10, %v1036_v8 }
 0x20a   : > { %v1093_v15 = vpack.c.bf16 %v1089_v11, %v1089_v11  ;;  %v1092_v16 = vpack.c.bf16 %v1088_v12, %v1088_v12 }
 0x20b   : > { %v894_v17 = vpop.permute.xlu1 %893  ;;  %v892_v18 = vpop.permute.xlu0 %891 }
 0x20c   : > { %1097 = vst.msk [vmem:[%s1909_s14 + $0x4] sm:$0xf] %vm911_vm4, %v1093_v15  ;;  %1096 = vst.msk [vmem:[%s1909_s14] sm:$0xf] %vm911_vm4, %v1092_v16  ;;  %v904_v19 = vadd.f32 %v894_v17, %v852_v13  ;;  %v903_v20 = vadd.f32 %v892_v18, %v851_v14 }
 0x20e   : > { %v908_v23 = vpack.c.bf16 %v904_v19, %v904_v19  ;;  %v907_v24 = vpack.c.bf16 %v903_v20, %v903_v20 }
 0x20f   : > { %v898_v25 = vpop.permute.xlu1 %897  ;;  %v896_v26 = vpop.permute.xlu0 %895 }
 0x210   : > { %913 = vst.msk [vmem:[%s407_s23 + $0x4] sm:$0xf] %vm911_vm4, %v908_v23  ;;  %912 = vst.msk [vmem:[%s407_s23] sm:$0xf] %vm911_vm4, %v907_v24  ;;  %v906_v27 = vadd.f32 %v898_v25, %v854_v21  ;;  %v905_v28 = vadd.f32 %v896_v26, %v853_v22 }
 0x212   : > { %v910_v32 = vpack.c.bf16 %v906_v27, %v906_v27  ;;  %v909_v33 = vpack.c.bf16 %v905_v28, %v905_v28 }
 0x213   : > { %v987_v34 = vpop.permute.xlu1 %986  ;;  %v985_v35 = vpop.permute.xlu0 %984 }
 0x214   : > { %915 = vst.msk [vmem:[%s407_s23 + $0xc] sm:$0xf] %vm911_vm4, %v910_v32  ;;  %914 = vst.msk [vmem:[%s407_s23 + $0x8] sm:$0xf] %vm911_vm4, %v909_v33  ;;  %v997_v36 = vadd.f32 %v987_v34, %v945_v29  ;;  %v996_v37 = vadd.f32 %v985_v35, %v944_v30 }
 0x215   : > { %1494 = shalt.err (!%p1491_p5)
}
 0x216   : > { %s1495_s12 = scalar_lea.hbm %s1931_s16, 256  ;;  %s1499_s20 = scalar_lea.hbm %s2090_s9, 512 }
 0x217   : > { %p1496_p6 = scmp.ne.s32.totalorder %s1931_s16, %s1495_s12  ;;  %p1500_p10 = scmp.lt.u32.totalorder %s1931_s16, %s2090_s9 }
 0x218   : > { %p1501_p11 = scmp.lt.u32.totalorder %s1499_s20, %s1495_s12  ;;  %p1503_p13 = scmp.lt.u32.totalorder %s1495_s12, %s1931_s16 }
 0x219   : > { %p1497_p7 = pnand %p1496_p6, %p1735_p4 }
 0x21a   : > { %p1502_p12 = por %p1501_p11, %p1500_p10 }
 0x21b   : > { %p1498_p9 = pneg %p1497_p7 }
 0x21c   : > { %p1504_p0 = por %p1503_p13, %p1502_p12 }
 0x21e   : > { %p1505_p1 = pnand %p1504_p0, %p1498_p9 }
 0x220   : > { %1508 = shalt.err (!%p1505_p1)
}
 0x221   : > { %s2096_s0 = smov 64   ;;  %s1630_s28 = smov 4   ;;  %v947_v38 = vmul.f32 %v1891_v61, %v1881_v49  ;;  %v946_v31 = vmul.f32 %v1893_v62, %v1881_v49  ;;  %v1001_v39 = vpack.c.bf16 %v997_v36, %v997_v36  ;;  %v1000_v40 = vpack.c.bf16 %v996_v37, %v996_v37  ;;  %v991_v41 = vpop.permute.xlu1 %990  ;;  %v989_v43 = vpop.permute.xlu0 %988 }
 0x222   : > { %1401 = dma.vmem_to_hbm [thread:$0]  (%p1735_p4), %s1923_s24, 256, %s1931_s16, %s1937_s26, %s2096_s0, %s2096_s0, %s1630_s28   ;;  %v1039_v47 = vmul.f32 %v1895_v5, %v1823_v46  ;;  %v1038_v48 = vmul.f32 %v1897_v6, %v1823_v46 }
 0x223   : > { %s414_s1 = scalar_lea.vmem [#allocation4], %s1904_s13  ;;  %s2107_s12 = sadd.s32 4294967295, %s1619_s22   ;;  %v999_v44 = vadd.f32 %v991_v41, %v947_v38  ;;  %v998_v45 = vadd.f32 %v989_v43, %v946_v31 }
 0x224   : > { %s1142_s2 = sshll.u32 %s414_s1, 4  ;;  %s1971_s23 = sand.u32 1, %s2107_s12   ;;  %1005 = vst.msk [vmem:[%s414_s1 + $0x4] sm:$0xf] %vm911_vm4, %v1001_v39  ;;  %1004 = vst.msk [vmem:[%s414_s1] sm:$0xf] %vm911_vm4, %v1000_v40  ;;  %s1975_s2 = int_to_ptr.vmem [resolvable:$true] %s1142_s2 }
 0x225   : > { %v1003_v49 = vpack.c.bf16 %v999_v44, %v999_v44  ;;  %v1002_v50 = vpack.c.bf16 %v998_v45, %v998_v45  ;;  %s1985_s16 = scalar_lea.hbm %s2091_s10, %s1919_s25  ;;  %v1083_v51 = vpop.permute.xlu1 %1082  ;;  %v1081_v52 = vpop.permute.xlu0 %1080  ;;  %s1509_s15 = scalar_lea.vmem %s1975_s2, 256 }
 0x226   : > { %v1091_v42 = vadd.f32 %v1083_v51, %v1039_v47  ;;  %v1090_v53 = vadd.f32 %v1081_v52, %v1038_v48  ;;  %p1510_p2 = scmp.ne.s32.totalorder %s1975_s2, %s1509_s15  ;;  %s1631_s12 = smov [#allocation4]  }
 0x227   : > { %1007 = vst.msk [vmem:[%s414_s1 + $0xc] sm:$0xf] %vm911_vm4, %v1003_v49  ;;  %1006 = vst.msk [vmem:[%s414_s1 + $0x8] sm:$0xf] %vm911_vm4, %v1002_v50  ;;  %s1513_s13 = sshll.u32 %s1631_s12, 4  ;;  %s1514_s13 = int_to_ptr.vmem [resolvable:$false] %s1513_s13 }
 0x228   : > { %p1511_p3 = pnand %p1510_p2, %p1735_p4  ;;  %s1515_s24 = scalar_lea.vmem %s1514_s13, 512 }
 0x229   : > { %p1516_p6 = scmp.lt.s32.totalorder %s1975_s2, %s1514_s13  ;;  %p1517_p7 = scmp.lt.s32.totalorder %s1515_s24, %s1509_s15 }
 0x22a   : > { %p1512_p5 = pneg %p1511_p3 }
 0x22b   : > { %p1518_p9 = por %p1517_p7, %p1516_p6 }
 0x22d   : > { %p1519_p10 = pnand %p1518_p9, %p1512_p5 }
 0x22f   : > { %1522 = shalt.err (!%p1519_p10)
}
 0x230   : > { %s1523_s1 = scalar_lea.hbm %s1985_s16, 256  ;;  %s1527_s12 = scalar_lea.hbm %s2091_s10, 512 }
 0x231   : > { %p1524_p11 = scmp.ne.s32.totalorder %s1985_s16, %s1523_s1  ;;  %p1528_p0 = scmp.lt.u32.totalorder %s1985_s16, %s2091_s10 }
 0x232   : > { %p1529_p1 = scmp.lt.u32.totalorder %s1527_s12, %s1523_s1  ;;  %p1531_p3 = scmp.lt.u32.totalorder %s1523_s1, %s1985_s16 }
 0x233   : > { %p1525_p12 = pnand %p1524_p11, %p1735_p4 }
 0x234   : > { %p1530_p2 = por %p1529_p1, %p1528_p0 }
 0x235   : > { %p1526_p13 = pneg %p1525_p12 }
 0x236   : > { %p1532_p5 = por %p1531_p3, %p1530_p2 }
 0x238   : > { %p1533_p6 = pnand %p1532_p5, %p1526_p13 }
 0x23a   : > { %1536 = shalt.err (!%p1533_p6)
}
 0x23b   : > { %s2108_s15 = smov 64   ;;  %s2109_s24 = scalar_lea.sflag [#allocation5], %s1971_s23  ;;  %v1095_v46 = vpack.c.bf16 %v1091_v42, %v1091_v42  ;;  %v1094_v54 = vpack.c.bf16 %v1090_v53, %v1090_v53 }
 0x23c   : > { %1402 = dma.vmem_to_hbm [thread:$0]  (%p1735_p4), %s1975_s2, 256, %s1985_s16, %s2109_s24, %s2108_s15, %s2108_s15, %s1630_s28  }
 0x23d   : > { %s2110_s0 = sshll.u32 %s1909_s14, 4  ;;  %s2025_s1 = scalar_lea.hbm %s2092_s11, %s1919_s25  ;;  %1099 = vst.msk [vmem:[%s1909_s14 + $0xc] sm:$0xf] %vm911_vm4, %v1095_v46  ;;  %1098 = vst.msk [vmem:[%s1909_s14 + $0x8] sm:$0xf] %vm911_vm4, %v1094_v54  ;;  %s2019_s0 = int_to_ptr.vmem [resolvable:$true] %s2110_s0 }
 0x23e   : > { %s1537_s12 = scalar_lea.vmem %s2019_s0, 256  ;;  %s1632_s2 = smov [#allocation6]  }
 0x23f   : > { %p1538_p7 = scmp.ne.s32.totalorder %s2019_s0, %s1537_s12  ;;  %s1541_s16 = sshll.u32 %s1632_s2, 4  ;;  %s1542_s16 = int_to_ptr.vmem [resolvable:$false] %s1541_s16 }
 0x240   : > { %s1543_s13 = scalar_lea.vmem %s1542_s16, 512  ;;  %p1544_p11 = scmp.lt.s32.totalorder %s2019_s0, %s1542_s16 }
 0x241   : > { %p1539_p9 = pnand %p1538_p7, %p1735_p4  ;;  %p1545_p12 = scmp.lt.s32.totalorder %s1543_s13, %s1537_s12 }
 0x243   : > { %p1540_p10 = pneg %p1539_p9  ;;  %p1546_p13 = por %p1545_p12, %p1544_p11 }
 0x245   : > { %p1547_p0 = pnand %p1546_p13, %p1540_p10 }
 0x247   : > { %1550 = shalt.err (!%p1547_p0)
}
 0x248   : > { %s1551_s14 = scalar_lea.hbm %s2025_s1, 256  ;;  %s1555_s26 = scalar_lea.hbm %s2092_s11, 512 }
 0x249   : > { %p1552_p1 = scmp.ne.s32.totalorder %s2025_s1, %s1551_s14  ;;  %p1556_p5 = scmp.lt.u32.totalorder %s2025_s1, %s2092_s11 }
 0x24a   : > { %p1557_p6 = scmp.lt.u32.totalorder %s1555_s26, %s1551_s14  ;;  %p1559_p9 = scmp.lt.u32.totalorder %s1551_s14, %s2025_s1 }
 0x24b   : > { %p1553_p2 = pnand %p1552_p1, %p1735_p4 }
 0x24c   : > { %p1558_p7 = por %p1557_p6, %p1556_p5 }
 0x24d   : > { %p1554_p3 = pneg %p1553_p2 }
 0x24e   : > { %p1560_p10 = por %p1559_p9, %p1558_p7 }
 0x250   : > { %p1561_p11 = pnand %p1560_p10, %p1554_p3 }
 0x252   : > { %1564 = shalt.err (!%p1561_p11)
}
 0x253   : > { %s2111_s12 = scalar_lea.sflag [#allocation5], %s1971_s23 }
 0x254   : > { %1403 = dma.vmem_to_hbm [thread:$0]  (%p1735_p4), %s2019_s0, 256, %s2025_s1, %s2111_s12, %s2108_s15, %s2108_s15, %s1630_s28  }
 0x255 PF: > { %p1417_p12 = scmp.ge.s32.totalorder %s1619_s22, 2  ;;  %s1174_s16 = sand.u32 1, %s1599_s17  }
 0x256   : > { %s1175_s13 = scalar_lea.sflag [#allocation3], %s1174_s16 }
 0x257   : > { %p1408_p13 = pnand %p1417_p12, %p1744_p8 }
 0x259   : > { %1590 = dma.done.wait (!%p1408_p13), %s1175_s13, 256  }
 0x25a   : > { %1592 = vsyncadd (!%p1408_p13), %s1175_s13, 4294967040  ;;  %s2112_s27 = sadd.s32 4294967294, %s1619_s22  }
 0x25b   : > { %s1183_s14 = sand.u32 1, %s2112_s27  }
 0x25c   : > { %s1184_s25 = scalar_lea.sflag [#allocation5], %s1183_s14 }
 0x25d   : > { %1594 = dma.done.wait (!%p1408_p13), %s1184_s25, 512  }
 0x25e   : > { %1596 = vsyncadd (!%p1408_p13), %s1184_s25, 4294966784  ;;  %s28_s22 = sadd.s32 1, %s1619_s22   ;;  %s2113_s28 = sld [smem:[#allocation9_spill]] }
 0x25f   : > { %p25_p4 = scmp.ge.s32.totalorder %s28_s22, 4   ;;  %s2114_s17 = smov %s1603_s18 }
 0x260   : > { %s2115_s18 = smov %s1607_s19  ;;  %s2116_s19 = smov %s1750_s30 }
 0x261   : > { %s2117_s20 = smov %s1615_s21  ;;  %27 = sbr.rel (!%p25_p4) target bundleno = 10 (0xa), region = 127 }
 0x264   : > { %s2118_s21 = smov %s2113_s28 }
 0x268   :  { %1198 = vsyncpa [#allocation3], 1 }
 0x269   :  { %1200 = vsyncpa [#allocation3 + $0x1], 1 }
 0x26a   :  { %1201 = vsyncpa [#allocation5], 1 }
 0x26b   :  { %1203 = vsyncpa [#allocation5 + $0x1], 1 }

</bundles_post_ra>
